<compile_context>
chip_gen: v7x
topology: tpu7x:2x2x1
jax: 0.10.0
libtpu: 0.0.40
codegen_flags: <defaults>
</compile_context>

<pallas_src>
import jax
import jax.numpy as jnp
from jax.experimental import pallas as pl
from jax.experimental.pallas import tpu as pltpu

EPS = 1e-06


def _round_up(a, b):
    return (a + b - 1) // b * b


def _vn_kernel(c_out, negative_slope, approx_recip):
    slope = float(negative_slope)
    split = 3 * c_out

    def kernel(x_ref, w_ref, sel_ref, selt_ref, o_ref):
        x = x_ref[...]                                   # (3*C_in, tn), native dtype
        w = w_ref[...]                                   # (6*C_out, 3*C_in)

        # One MXU matmul produces p and d for all 3 components, f32 accumulation.
        pd = jnp.dot(w, x, preferred_element_type=jnp.float32)   # (6*C_out, tn)
        p = pd[:split]                                   # rows ordered [co*3 + k]
        d = pd[split:]

        sel = sel_ref[...]                               # (C_out, 3*C_out) 0/1 group-sum
        selt = selt_ref[...]                             # (3*C_out, C_out) group-broadcast

        # Per-channel reductions over the 3 vector components (tiny MXU matmuls).
        dot = jnp.dot(sel, p * d, preferred_element_type=jnp.float32)   # (C_out, tn)
        dsq = jnp.dot(sel, d * d, preferred_element_type=jnp.float32)   # (C_out, tn)

        # LeakyReLU epilogue, simplified:  out = p - [dot<0]*(1-slope)*dot/(dsq+EPS) * d
        # (approx_recip=True moves the divide fully onto the EUP at ~1e-4 rel. error)
        inv = pl.reciprocal(dsq + EPS, approx=approx_recip)
        coef = jnp.where(dot < 0.0, (1.0 - slope) * dot * inv, 0.0)     # (C_out, tn)
        coef_rows = jnp.dot(selt, coef, preferred_element_type=jnp.float32)

        o_ref[...] = (p - coef_rows * d).astype(o_ref.dtype)

    return kernel


def vn_linear_leakyrelu(x, w_feat, w_dir, negative_slope=0.2, tn=512,
                        approx_recip=False):
    """VNLinearLeakyReLU forward.

    x:      [B, C_in, 3, N]
    w_feat: [C_out, C_in]               (nn.Linear weight of map_to_feat)
    w_dir:  [C_out, C_in] or [1, C_in]  (map_to_dir; share_nonlinearity supported)
    returns [B, C_out, 3, N]
    """
    B, C_in, three, N = x.shape
    assert three == 3
    C_out = w_feat.shape[0]
    if w_dir.shape[0] == 1:                       # share_nonlinearity=True
        w_dir = jnp.broadcast_to(w_dir, (C_out, C_in))

    # --- tiny weight preprocessing (negligible; weights only) ---
    eye3 = jnp.eye(3, dtype=w_feat.dtype)
    w_big = jnp.concatenate(
        [jnp.kron(w_feat, eye3), jnp.kron(w_dir, eye3)], axis=0).astype(x.dtype)
    sel = jnp.kron(jnp.eye(C_out, dtype=jnp.float32),
                   jnp.ones((1, 3), dtype=jnp.float32))           # (C_out, 3*C_out)
    selt = sel.T                                                  # (3*C_out, C_out)

    # --- lane-tile (over N) selection: big, 128-aligned, VMEM/megacore aware ---
    itemsize = jnp.dtype(x.dtype).itemsize
    tn_eff = max(128, (min(tn, _round_up(N, 128)) // 128) * 128)
    vmem_budget = 20 * 1024 * 1024      # headroom under v7x's 64 MiB physical VMEM

    def _est(t):  # double-buffered I/O tiles + f32 intermediates
        return t * (2 * 3 * C_in * itemsize + 2 * 3 * C_out * itemsize
                    + 12 * C_out * 4)

    while tn_eff > 128 and _est(tn_eff) > vmem_budget:
        tn_eff = max(128, (tn_eff // 2 // 128) * 128)
    if B * pl.cdiv(N, tn_eff) < 2 and tn_eff > 128:   # keep both v7x cores busy
        tn_eff = max(128, (tn_eff // 2 // 128) * 128)

    N_pad = _round_up(N, tn_eff)
    x2 = x.reshape(B, 3 * C_in, N)                    # free (adjacent-dim) reshape
    if N_pad != N:
        x2 = jnp.pad(x2, ((0, 0), (0, 0), (0, N_pad - N)))

    out2 = pl.pallas_call(
        _vn_kernel(C_out, negative_slope, approx_recip),
        out_shape=jax.ShapeDtypeStruct((B, 3 * C_out, N_pad), x.dtype),
        grid_spec=pltpu.PrefetchScalarGridSpec(
            num_scalar_prefetch=0,
            grid=(B, N_pad // tn_eff),
            in_specs=[
                pl.BlockSpec((None, 3 * C_in, tn_eff), lambda b, j: (b, 0, j)),
                pl.BlockSpec((6 * C_out, 3 * C_in), lambda b, j: (0, 0)),
                pl.BlockSpec((C_out, 3 * C_out), lambda b, j: (0, 0)),
                pl.BlockSpec((3 * C_out, C_out), lambda b, j: (0, 0)),
            ],
            out_specs=pl.BlockSpec((None, 3 * C_out, tn_eff),
                                   lambda b, j: (b, 0, j)),
        ),
        compiler_params=pltpu.CompilerParams(
            dimension_semantics=("parallel", "parallel"),
            vmem_limit_bytes=32 * 1024 * 1024,
        ),
    )(x2, w_big, sel, selt)

    if N_pad != N:
        out2 = out2[:, :, :N]
    return out2.reshape(B, C_out, 3, N)               # free (adjacent-dim) reshape


def _reference(x, w_feat, w_dir, negative_slope=0.2):
    # Pure-JAX mirror of the PyTorch forward.
    p = jnp.einsum('bikn,oi->bokn', x, w_feat)
    d = jnp.einsum('bikn,oi->bokn', x, w_dir)
    dot = jnp.sum(p * d, axis=2, keepdims=True)
    mask = (dot >= 0).astype(p.dtype)
    dsq = jnp.sum(d * d, axis=2, keepdims=True)
    return negative_slope * p + (1 - negative_slope) * (
        mask * p + (1 - mask) * (p - dot / (dsq + EPS) * d))


if __name__ == "__main__":
    key = jax.random.PRNGKey(0)
    kx, kf, kd, kx2 = jax.random.split(key, 4)

    # Main case: tile-aligned N, grid = (B=2) x (N tiles=2).
    B, C_in, C_out, N = 2, 4, 8, 1024
    x = jax.random.normal(kx, (B, C_in, 3, N), dtype=jnp.float32)
    w_feat = jax.random.normal(kf, (C_out, C_in), dtype=jnp.float32) * 0.1
    w_dir = jax.random.normal(kd, (C_out, C_in), dtype=jnp.float32) * 0.1

    out = jax.block_until_ready(
        vn_linear_leakyrelu(x, w_feat, w_dir, negative_slope=0.2))
    ref = _reference(x, w_feat, w_dir, negative_slope=0.2)
    assert out.shape == (B, C_out, 3, N)
    assert jnp.allclose(out, ref, atol=1e-5, rtol=1e-5), \
        float(jnp.max(jnp.abs(out - ref)))

    # Ragged case: N not a multiple of the lane tile (exercises padded tail path).
    x_r = jax.random.normal(kx2, (1, C_in, 3, 200), dtype=jnp.float32)
    out_r = jax.block_until_ready(
        vn_linear_leakyrelu(x_r, w_feat, w_dir, negative_slope=0.2))
    ref_r = _reference(x_r, w_feat, w_dir, negative_slope=0.2)
    assert out_r.shape == (1, C_out, 3, 200)
    assert jnp.allclose(out_r, ref_r, atol=1e-5, rtol=1e-5), \
        float(jnp.max(jnp.abs(out_r - ref_r)))

    print("KERNEL_OK")
</pallas_src>

<mosaic_0001>
module attributes {stable_mosaic.version = 11 : i64} {
  func.func @kernel(%arg0: i32, %arg1: i32, %arg2: memref<1x12x512xf32, #tpu.memory_space<vmem>>, %arg3: memref<48x12xf32, #tpu.memory_space<vmem>>, %arg4: memref<8x24xf32, #tpu.memory_space<vmem>>, %arg5: memref<24x8xf32, #tpu.memory_space<vmem>>, %arg6: memref<1x24x512xf32, #tpu.memory_space<vmem>>) attributes {dimension_semantics = [#tpu.dimension_semantics<parallel>, #tpu.dimension_semantics<parallel>], iteration_bounds = array<i64: 2, 2>, scalar_prefetch = 0 : i64, scratch_operands = 0 : i64, tpu.core_type = #tpu.core_type<tc>, window_params = [{transform_indices = @transform_0, window_bounds = array<i64: 1, 12, 512>}, {pipeline_mode = #tpu.pipeline_mode<synchronous>, transform_indices = @transform_1, window_bounds = array<i64: 48, 12>}, {pipeline_mode = #tpu.pipeline_mode<synchronous>, transform_indices = @transform_2, window_bounds = array<i64: 8, 24>}, {pipeline_mode = #tpu.pipeline_mode<synchronous>, transform_indices = @transform_3, window_bounds = array<i64: 24, 8>}, {transform_indices = @transform_4, window_bounds = array<i64: 1, 24, 512>}]} {
    %c0 = arith.constant 0 : index
    %c0_0 = arith.constant 0 : index
    %c0_1 = arith.constant 0 : index
    %0 = vector.load %arg2[%c0, %c0_0, %c0_1] : memref<1x12x512xf32, #tpu.memory_space<vmem>>, vector<1x12x512xf32>
    %1 = vector.shape_cast %0 : vector<1x12x512xf32> to vector<12x512xf32>
    %c0_2 = arith.constant 0 : index
    %c0_3 = arith.constant 0 : index
    %2 = vector.load %arg3[%c0_2, %c0_3] : memref<48x12xf32, #tpu.memory_space<vmem>>, vector<48x12xf32>
    %cst = arith.constant dense<0.000000e+00> : vector<48x512xf32>
    %3 = tpu.matmul %2, %1, %cst {dimension_numbers = #tpu.dot_dimension_numbers<[1], [0], [0], [1], [0, 0, 1, 1], [], []>} : vector<48x12xf32>, vector<12x512xf32>, vector<48x512xf32> -> vector<48x512xf32>
    %4 = vector.extract_strided_slice %3 {offsets = [0, 0], sizes = [24, 512], strides = [1, 1]} : vector<48x512xf32> to vector<24x512xf32>
    %5 = vector.extract_strided_slice %3 {offsets = [24, 0], sizes = [24, 512], strides = [1, 1]} : vector<48x512xf32> to vector<24x512xf32>
    %c0_4 = arith.constant 0 : index
    %c0_5 = arith.constant 0 : index
    %6 = vector.load %arg4[%c0_4, %c0_5] : memref<8x24xf32, #tpu.memory_space<vmem>>, vector<8x24xf32>
    %c0_6 = arith.constant 0 : index
    %c0_7 = arith.constant 0 : index
    %7 = vector.load %arg5[%c0_6, %c0_7] : memref<24x8xf32, #tpu.memory_space<vmem>>, vector<24x8xf32>
    %8 = arith.mulf %4, %5 : vector<24x512xf32>
    %cst_8 = arith.constant dense<0.000000e+00> : vector<8x512xf32>
    %9 = tpu.matmul %6, %8, %cst_8 {dimension_numbers = #tpu.dot_dimension_numbers<[1], [0], [0], [1], [0, 0, 1, 1], [], []>} : vector<8x24xf32>, vector<24x512xf32>, vector<8x512xf32> -> vector<8x512xf32>
    %10 = arith.mulf %5, %5 : vector<24x512xf32>
    %cst_9 = arith.constant dense<0.000000e+00> : vector<8x512xf32>
    %11 = tpu.matmul %6, %10, %cst_9 {dimension_numbers = #tpu.dot_dimension_numbers<[1], [0], [0], [1], [0, 0, 1, 1], [], []>} : vector<8x24xf32>, vector<24x512xf32>, vector<8x512xf32> -> vector<8x512xf32>
    %cst_10 = arith.constant 9.99999997E-7 : f32
    %12 = vector.broadcast %cst_10 : f32 to vector<8x512xf32>
    %13 = arith.addf %11, %12 : vector<8x512xf32>
    %14 = tpu.reciprocal %13 : vector<8x512xf32> -> vector<8x512xf32>
    %cst_11 = arith.constant 0.000000e+00 : f32
    %15 = vector.broadcast %cst_11 : f32 to vector<8x512xf32>
    %16 = arith.cmpf olt, %9, %15 : vector<8x512xf32>
    %cst_12 = arith.constant 8.000000e-01 : f32
    %17 = vector.broadcast %cst_12 : f32 to vector<8x512xf32>
    %18 = arith.mulf %17, %9 : vector<8x512xf32>
    %19 = arith.mulf %18, %14 : vector<8x512xf32>
    %cst_13 = arith.constant 0.000000e+00 : f32
    %20 = vector.broadcast %cst_13 : f32 to vector<8x512xf32>
    %21 = arith.select %16, %19, %20 : vector<8x512xi1>, vector<8x512xf32>
    %cst_14 = arith.constant dense<0.000000e+00> : vector<24x512xf32>
    %22 = tpu.matmul %7, %21, %cst_14 {dimension_numbers = #tpu.dot_dimension_numbers<[1], [0], [0], [1], [0, 0, 1, 1], [], []>} : vector<24x8xf32>, vector<8x512xf32>, vector<24x512xf32> -> vector<24x512xf32>
    %23 = arith.mulf %22, %5 : vector<24x512xf32>
    %24 = arith.subf %4, %23 : vector<24x512xf32>
    %c0_15 = arith.constant 0 : index
    %c0_16 = arith.constant 0 : index
    %c0_17 = arith.constant 0 : index
    %25 = vector.load %arg6[%c0_15, %c0_16, %c0_17] : memref<1x24x512xf32, #tpu.memory_space<vmem>>, vector<1x24x512xf32>
    %26 = vector.shape_cast %25 : vector<1x24x512xf32> to vector<24x512xf32>
    %27 = vector.shape_cast %24 : vector<24x512xf32> to vector<1x24x512xf32>
    tpu.vector_store %arg6[%c0_15, %c0_16, %c0_17], %27 {strides = array<i32>} : memref<1x24x512xf32, #tpu.memory_space<vmem>>, vector<1x24x512xf32>,
    return
  }
  func.func @transform_0(%arg0: i32, %arg1: i32) -> (i32, i32, i32) {
    %c0_i32 = arith.constant 0 : i32
    %c0_i32_0 = arith.constant 0 : i32
    return %arg0, %c0_i32, %arg1 : i32, i32, i32
  }
  func.func @transform_1(%arg0: i32, %arg1: i32) -> (i32, i32) {
    %c0_i32 = arith.constant 0 : i32
    %c0_i32_0 = arith.constant 0 : i32
    %c0_i32_1 = arith.constant 0 : i32
    return %c0_i32, %c0_i32_0 : i32, i32
  }
  func.func @transform_2(%arg0: i32, %arg1: i32) -> (i32, i32) {
    %c0_i32 = arith.constant 0 : i32
    %c0_i32_0 = arith.constant 0 : i32
    %c0_i32_1 = arith.constant 0 : i32
    return %c0_i32, %c0_i32_0 : i32, i32
  }
  func.func @transform_3(%arg0: i32, %arg1: i32) -> (i32, i32) {
    %c0_i32 = arith.constant 0 : i32
    %c0_i32_0 = arith.constant 0 : i32
    %c0_i32_1 = arith.constant 0 : i32
    return %c0_i32, %c0_i32_0 : i32, i32
  }
  func.func @transform_4(%arg0: i32, %arg1: i32) -> (i32, i32, i32) {
    %c0_i32 = arith.constant 0 : i32
    %c0_i32_0 = arith.constant 0 : i32
    return %arg0, %c0_i32, %arg1 : i32, i32, i32
  }
}

</mosaic_0001>

<bundles_post_ra>
// kernel: tpu_custom_call.1
= control target key start
LH: loop header
LB: loop body
LE: loop exit
PB: predicated region body
PF: predicated region fallthrough
CT: control target
= control target key end

     0   :  { %9 = vsyncpa [#allocation4], 0  ;;  %s1804_s0 = inlined_call_operand.vmem [shape: f32[2,12,1024], index: 0, kind: input, shape index: {}]   ;;  %s1805_s1 = inlined_call_operand.vmem [shape: f32[48,12], index: 1, kind: input, shape index: {}]   ;;  %s1806_s2 = inlined_call_operand.vmem [shape: f32[8,24], index: 2, kind: input, shape index: {}]   ;;  %s1807_s3 = inlined_call_operand.vmem [shape: f32[24,8], index: 3, kind: input, shape index: {}]   ;;  %s1808_s4 = inlined_call_operand.hbm [shape: f32[2,24,1024], index: 4, kind: output, shape index: {}]  }
   0x1   :  { %11 = vsyncpa [#allocation4 + $0x1], 0  ;;  %s1432_s15 = smov 0   ;;  %s1434_s16 = smov 0  }
   0x2   :  { %s1436_s17 = smov 0   ;;  %s1438_s18 = smov 0  }
   0x3   :  { %s1440_s19 = smov 0   ;;  %s1442_s20 = smov 0  }
   0x4   :  { %s1444_s21 = smov 0   ;;  %s1446_s22 = smov 0  }
   0x5 LB: > { %s1147_s23 = sadd.s32 4294967295, %s1399_s22   ;;  %s1148_s24 = sadd.s32 4294967294, %s1399_s22   ;;  %s1399_s22 = sphi %s1446_s22, %s17_s22   ;;  %s1395_s21 = sphi %s1444_s21, %s1820_s21   ;;  %s1391_s20 = sphi %s1442_s20, %s1819_s20   ;;  %s1387_s19 = sphi %s1440_s19, %s1818_s19   ;;  %s1383_s18 = sphi %s1438_s18, %s1817_s18   ;;  %s1379_s17 = sphi %s1436_s17, %s1816_s17   ;;  %s1375_s16 = sphi %s1434_s16, %s1815_s16   ;;  %s1371_s15 = sphi %s1432_s15, %s1814_s15  }
   0x6   : > { %s26_s25 = sadd.s32 1, %s1391_s20  ;;  %s29_s26 = sadd.s32 1, %s1395_s21 }
   0x7   : > { %p27_p0 = scmp.ge.s32.totalorder %s26_s25, 2  ;;  %p45_p1 = scmp.ne.s32.totalorder %s1379_s17, %s1375_s16 }
   0x8   : > { %p46_p2 = scmp.eq.s32.totalorder %s1399_s22, 0  ;;  %p140_p5 = scmp.eq.s32.totalorder %s1147_s23, 3 }
   0x9   : > { %s1822_s25 = smov (%p27_p0, %s26_s25), 0  ;;  %s1824_s26 = smov (!%p27_p0, %s29_s26), %s1395_s21 }
   0xa   : > { %s34_s27 = ssub.s32 %s1391_s20, %s1822_s25  ;;  %p1484_p3 = por %p46_p2, %p45_p1 }
   0xb   : > { %p31_p4 = scmp.ge.s32.totalorder %s1824_s26, 2  ;;  %p145_p6 = scmp.ne.s32.totalorder %s1375_s16, %s1371_s15 }
   0xc   : > { %p146_p7 = scmp.eq.s32.totalorder %s1148_s24, 3  ;;  %p1492_p8 = por %p140_p5, %p45_p1 }
   0xd   : > { %s1826_s26 = smov (%p31_p4, %s1824_s26), 0  ;;  %s38_s7 = sadd.s32 1, %s1379_s17 }
   0xe   : > { %p1496_p9 = por %p146_p7, %p145_p6  ;;  %s33_s5 = ssub.s32 %s1395_s21, %s1826_s26 }
   0xf   : > { %s35_s6 = sor.u32 %s34_s27, %s33_s5  ;;  %p1150_p11 = scmp.ge.s32.totalorder %s1399_s22, 4 }
  0x10   : > { %p36_p10 = scmp.eq.s32.totalorder %s35_s6, 0 }
  0x11   : > { %171 = sbr.rel (%p1150_p11) target bundleno = 35 (0x23), region = 28 }
  0x12   : > { %s1504_s8 = scalar_select %p36_p10, %s1379_s17, %s38_s7  }
  0x18   : > { %174 = sbr.rel (!%p1484_p3) target bundleno = 35 (0x23), region = 32  ;;  %s176_s9 = sand.u32 (%p1484_p3), 1, %s1379_s17  }
  0x19   : > { %s1152_s10 = sshll.u32 (%p1484_p3), %s1391_s20, 2  ;;  %s1151_s11 = sshll.u32 (%p1484_p3), %s176_s9, 6 }
  0x1a   : > { %s1153_s12 = sshll.u32 (%p1484_p3), %s1395_s21, 4  ;;  %s178_s5 = scalar_lea.vmem (%p1484_p3), [#allocation2], %s1151_s11 }
  0x1b   : > { %s181_s13 = sadd.s32 (%p1484_p3), %s1153_s12, %s1152_s10 }
  0x1c   : > { %s1154_s14 = sshll.u32 (%p1484_p3), %s181_s13, 3 }
  0x1d   : > { %s183_s27 = scalar_lea.vmem (%p1484_p3), %s1804_s0, %s1154_s14 }
  0x1e   : > { %v196_v0 = vld [vmem:[%s183_s27] sm:$0xff] (%p1484_p3)  ;;  %v198_v1 = vld [vmem:[%s183_s27 + $0x8] sm:$0xff] (%p1484_p3)  ;;  %v200_v2 = vld [vmem:[%s183_s27 + $0x10] sm:$0xff] (%p1484_p3) }
  0x1f   : > { %197 = vst [vmem:[%s178_s5] sm:$0xff] %v196_v0  ;;  %199 = vst [vmem:[%s178_s5 + $0x8] sm:$0xff] %v198_v1  ;;  %v202_v3 = vld [vmem:[%s183_s27 + $0x18] sm:$0xff]  ;;  %v204_v4 = vld [vmem:[%s183_s27 + $0x40] sm:$0xff] }
  0x20   : > { %201 = vst [vmem:[%s178_s5 + $0x10] sm:$0xff] %v200_v2  ;;  %v206_v5 = vld [vmem:[%s183_s27 + $0x48] sm:$0xff]  ;;  %203 = vst [vmem:[%s178_s5 + $0x18] sm:$0xff] %v202_v3  ;;  %v208_v6 = vld [vmem:[%s183_s27 + $0x50] sm:$0xff] }
  0x21   : > { %205 = vst [vmem:[%s178_s5 + $0x20] sm:$0xff] %v204_v4  ;;  %207 = vst [vmem:[%s178_s5 + $0x28] sm:$0xff] %v206_v5  ;;  %v210_v7 = vld [vmem:[%s183_s27 + $0x58] sm:$0xff] }
  0x22   : > { %209 = vst [vmem:[%s178_s5 + $0x30] sm:$0xff] %v208_v6  ;;  %211 = vst [vmem:[%s178_s5 + $0x38] sm:$0xff] %v210_v7 }
  0x23 PF: > { %p1155_p12 = scmp.ge.s32.totalorder %s1399_s22, 1  ;;  %p216_p13 = scmp.lt.s32.totalorder %s1399_s22, 5 }
  0x25   : > { %p217_p0 = pnand %p1155_p12, %p216_p13 }
  0x26   : > { %s1518_s28 = sand.u32 (!%p217_p0), 1, %s1375_s16   ;;  %vm283_vm0 = vcmask (!%p217_p0), 1043456   ;;  %v1401_v8 = vmov (!%p217_p0), 0.0   ;;  %vm1402_vm1 = vmmov (!%p217_p0), 1   ;;  %v258_v22 = vld [vmem:[%s1805_s1] sm:$0xff] (!%p217_p0)  ;;  %vm264_vm3 = vcmask (!%p217_p0), 97280  }
  0x27   : > { %220 = sbr.rel (%p217_p0) target bundleno = 768 (0x300), region = 55  ;;  %s1156_s6 = sshll.u32 (!%p217_p0), %s1518_s28, 6  ;;  %360 = vmatprep.mubr.f32.mxu0 (!%p217_p0), %v1401_v8  ;;  %461 = vmatprep.mubr.f32.mxu1 (!%p217_p0), %v1401_v8  ;;  %vm1523_vm2 = vmpackc.low (!%p217_p0), %vm283_vm0, %vm1402_vm1  ;;  %v259_v23 = vld [vmem:[%s1805_s1 + $0x8] sm:$0xff] (!%p217_p0)  ;;  %v260_v24 = vld [vmem:[%s1805_s1 + $0x10] sm:$0xff] (!%p217_p0)  ;;  %vm514_vm4 = vcmask (!%p217_p0), 195584   ;;  %vm834_vm6 = vcmask (!%p217_p0), 64512  }
  0x28   : > { %s225_s7 = scalar_lea.vmem (!%p217_p0), [#allocation2], %s1156_s6  ;;  %v261_v25 = vld [vmem:[%s1805_s1 + $0x18] sm:$0xff] (!%p217_p0)  ;;  %v262_v26 = vld [vmem:[%s1805_s1 + $0x20] sm:$0xff] (!%p217_p0)  ;;  %v263_v27 = vld [vmem:[%s1805_s1 + $0x28] sm:$0xff] (!%p217_p0)  ;;  %s1219_s27 = smul.u32 (!%p217_p0), 96, %s1518_s28 }
  0x29   : > { %v251_v10 = vld [vmem:[%s225_s7 + $0x8] sm:$0xff] (!%p217_p0)  ;;  %v253_v12 = vld [vmem:[%s225_s7 + $0x18] sm:$0xff] (!%p217_p0)  ;;  %v250_v15 = vld [vmem:[%s225_s7] sm:$0xff] (!%p217_p0)  ;;  %s1220_s5 = smul.u32 (!%p217_p0), 24, %s1387_s19  ;;  %s1187_s6 = sshll.u32 (!%p217_p0), %s1383_s18, 2 }
  0x2a   : > { %v255_v11 = vld [vmem:[%s225_s7 + $0x28] sm:$0xf] (!%p217_p0)  ;;  %v257_v14 = vld [vmem:[%s225_s7 + $0x38] sm:$0xf] (!%p217_p0)  ;;  %v254_v16 = vld [vmem:[%s225_s7 + $0x20] sm:$0xf] (!%p217_p0) }
  0x2b   : > { %v1191_v13 = vpack.c.bf16 (!%p217_p0), %v255_v11, %v251_v10  ;;  %v1197_v17 = vpack.c.bf16 (!%p217_p0), %v257_v14, %v253_v12  ;;  %v1194_v18 = vpack.c.bf16 (!%p217_p0), %v254_v16, %v250_v15  ;;  %v252_v19 = vld [vmem:[%s225_s7 + $0x10] sm:$0xff] (!%p217_p0)  ;;  %s1059_s18 = sadd.s32 (!%p217_p0), %s1220_s5, %s1187_s6  ;;  %s1047_s13 = scalar_lea.sflag (!%p217_p0), [#allocation4], %s1518_s28 }
  0x2c   : > { %v256_v20 = vld [vmem:[%s225_s7 + $0x30] sm:$0xf] (!%p217_p0)  ;;  %s1713_s7 = scalar_lea.vmem (!%p217_p0), [#allocation3], %s1219_s27  ;;  %s1188_s9 = sshll.u32 (!%p217_p0), %s1059_s18, 7 }
  0x2d   : > { %1193 = vmatprep.subr.msk.bf16.mxu0 (!%p217_p0), %vm1523_vm2, %v1191_v13  ;;  %v1200_v21 = vpack.c.bf16 (!%p217_p0), %v256_v20, %v252_v19  ;;  %1199 = vmatprep.subr.msk.bf16.mxu1 (!%p217_p0), %vm1523_vm2, %v1197_v17  ;;  %v498_v17 = vld [vmem:[%s1806_s2] sm:$0xff] (!%p217_p0)  ;;  %s1062_s19 = sshll.u32 (!%p217_p0), %s1713_s7, 4  ;;  %s1745_s12 = scalar_lea.hbm (!%p217_p0), %s1808_s4, %s1188_s9  ;;  %s1735_s19 = int_to_ptr.vmem [resolvable:$true] %s1062_s19 }
  0x2e   : > { %1196 = vmatpush1.bf16.msk.msra.mxu0 %vm1523_vm2, %v1194_v18  ;;  %s1305_s14 = scalar_lea.vmem %s1735_s19, 1536  ;;  %s1403_s23 = smov [#allocation3]  }
  0x2f   : > { %1202 = vmatpush1.bf16.msk.msra.mxu1 %vm1523_vm2, %v1200_v21  ;;  %p1306_p1 = scmp.ne.s32.totalorder %s1735_s19, %s1305_s14  ;;  %s1309_s24 = sshll.u32 %s1403_s23, 4  ;;  %s1310_s24 = int_to_ptr.vmem [resolvable:$false] %s1309_s24 }
  0x30   : > { %s1311_s27 = scalar_lea.vmem %s1310_s24, 3072  ;;  %p1312_p4 = scmp.lt.s32.totalorder %s1735_s19, %s1310_s24 }
  0x31   : > { %1159 = vmatmul.mubr.msk.f32.vlgmr.msra.gmra.mrb[0].mxu0 %vm264_vm3, %v258_v22  ;;  %p1307_p2 = pnand %p1306_p1, %p1492_p8  ;;  %p1313_p5 = scmp.lt.s32.totalorder %s1311_s27, %s1305_s14 }
  0x32   : > { %1167 = vmatmul.mubr.msk.f32.vlgmr.msra.gmra.mrb[0].mxu1 %vm264_vm3, %v258_v22  ;;  %366 = vmatprep.mubr.f32.mxu0 %v1401_v8 }
  0x33   : > { %467 = vmatprep.mubr.f32.mxu1 %v1401_v8  ;;  %p1308_p3 = pneg %p1307_p2  ;;  %p1314_p6 = por %p1313_p5, %p1312_p4 }
  0x35   : > { %1160 = vmatmul.mubr.msk.f32.gmra.mrb[2].mxu0 %vm264_vm3, %v259_v23  ;;  %p1315_p7 = pnand %p1314_p6, %p1308_p3 }
  0x36   : > { %1168 = vmatmul.mubr.msk.f32.gmra.mrb[2].mxu1 %vm264_vm3, %v259_v23  ;;  %372 = vmatprep.mubr.f32.mxu0 %v1401_v8 }
  0x37   : > { %473 = vmatprep.mubr.f32.mxu1 %v1401_v8 }
  0x39   : > { %1161 = vmatmul.mubr.msk.f32.gmra.mrb[4].mxu0 %vm264_vm3, %v260_v24 }
  0x3a   : > { %1169 = vmatmul.mubr.msk.f32.gmra.mrb[4].mxu1 %vm264_vm3, %v260_v24  ;;  %378 = vmatprep.mubr.f32.mxu0 %v1401_v8 }
  0x3b   : > { %479 = vmatprep.mubr.f32.mxu1 %v1401_v8 }
  0x3d   : > { %1162 = vmatmul.mubr.msk.f32.gmra.mrb[6].mxu0 %vm264_vm3, %v261_v25 }
  0x3e   : > { %1170 = vmatmul.mubr.msk.f32.gmra.mrb[6].mxu1 %vm264_vm3, %v261_v25  ;;  %384 = vmatprep.mubr.f32.mxu0 %v1401_v8 }
  0x3f   : > { %485 = vmatprep.mubr.f32.mxu1 %v1401_v8 }
  0x41   : > { %1163 = vmatmul.mubr.msk.f32.gmra.mrb[8].mxu0 %vm264_vm3, %v262_v26 }
  0x42   : > { %1171 = vmatmul.mubr.msk.f32.gmra.mrb[8].mxu1 %vm264_vm3, %v262_v26  ;;  %390 = vmatprep.mubr.f32.mxu0 %v1401_v8 }
  0x43   : > { %491 = vmatprep.mubr.f32.mxu1 %v1401_v8 }
  0x45   : > { %1164 = vmatmul.mubr.msk.f32.gmra.mrb[10].mxu0 %vm264_vm3, %v263_v27 }
  0x46   : > { %1172 = vmatmul.mubr.msk.f32.gmra.mrb[10].mxu1 %vm264_vm3, %v263_v27  ;;  %582 = vmatprep.mubr.f32.mxu0 %v1401_v8 }
  0x47   : > { %653 = vmatprep.mubr.f32.mxu1 %v1401_v8 }
 0x104   : > { %v1577_v28 = vpop.f32.mrb[0].mxu0 }
 0x105   : > { %v1579_v29 = vpop.f32.mrb[0].mxu1  ;;  %v1581_v30 = vpop.f32.mrb[1].mxu0 }
 0x106   : > { %v1583_v31 = vpop.f32.mrb[1].mxu1 }
 0x108   : > { %v1585_v32 = vpop.f32.mrb[2].mxu0 }
 0x109   : > { %v1587_v33 = vpop.f32.mrb[2].mxu1  ;;  %v1589_v34 = vpop.f32.mrb[3].mxu0 }
 0x10a   : > { %v1591_v35 = vpop.f32.mrb[3].mxu1 }
 0x10c   : > { %v1593_v36 = vpop.f32.mrb[4].mxu0 }
 0x10d   : > { %v1595_v37 = vpop.f32.mrb[4].mxu1  ;;  %v1597_v38 = vpop.f32.mrb[5].mxu0 }
 0x10e   : > { %v1599_v39 = vpop.f32.mrb[5].mxu1 }
 0x110   : > { %v1601_v40 = vpop.f32.mrb[6].mxu0 }
 0x111   : > { %v502_v41 = vmul.f32 %v1601_v40, %v1577_v28  ;;  %v1605_v42 = vpop.f32.mrb[6].mxu1  ;;  %v1607_v43 = vpop.f32.mrb[7].mxu0  ;;  %v660_v48 = vmul.f32 %v1601_v40, %v1601_v40 }
 0x112   : > { %v504_v44 = vmul.f32 %v1605_v42, %v1579_v29  ;;  %v503_v45 = vmul.f32 %v1607_v43, %v1581_v30  ;;  %v1613_v46 = vpop.f32.mrb[7].mxu1  ;;  %v662_v49 = vmul.f32 %v1605_v42, %v1605_v42  ;;  %v661_v51 = vmul.f32 %v1607_v43, %v1607_v43 }
 0x113   : > { %v505_v47 = vmul.f32 %v1613_v46, %v1583_v31  ;;  %v663_v52 = vmul.f32 %v1613_v46, %v1613_v46 }
 0x114   : > { %v1621_v50 = vpop.f32.mrb[8].mxu0 }
 0x115   : > { %v506_v53 = vmul.f32 %v1621_v50, %v1585_v32  ;;  %v664_v54 = vmul.f32 %v1621_v50, %v1621_v50  ;;  %v1631_v55 = vpop.f32.mrb[8].mxu1  ;;  %v1633_v56 = vpop.f32.mrb[9].mxu0 }
 0x116   : > { %v508_v57 = vmul.f32 %v1631_v55, %v1587_v33  ;;  %v666_v58 = vmul.f32 %v1631_v55, %v1631_v55  ;;  %v507_v59 = vmul.f32 %v1633_v56, %v1589_v34  ;;  %v665_v60 = vmul.f32 %v1633_v56, %v1633_v56  ;;  %v1643_v61 = vpop.f32.mrb[9].mxu1 }
 0x117   : > { %v1205_v62 = vpack.c.bf16 %v506_v53, %v502_v41  ;;  %v1213_v63 = vpack.c.bf16 %v664_v54, %v660_v48  ;;  %v509_v0 = vmul.f32 %v1643_v61, %v1591_v35  ;;  %v667_v1 = vmul.f32 %v1643_v61, %v1643_v61 }
 0x118   : > { %v1209_v2 = vpack.c.bf16 %v508_v57, %v504_v44  ;;  %v1217_v3 = vpack.c.bf16 %v666_v58, %v662_v49  ;;  %v1649_v4 = vpop.f32.mrb[10].mxu0  ;;  %v1203_v5 = vpack.c.bf16 %v507_v59, %v503_v45  ;;  %v1211_v6 = vpack.c.bf16 %v665_v60, %v661_v51 }
 0x119   : > { %v510_v7 = vmul.f32 %v1649_v4, %v1593_v36  ;;  %v1653_v9 = vpop.f32.mrb[10].mxu1  ;;  %v1655_v10 = vpop.f32.mrb[11].mxu0  ;;  %v1207_v11 = vpack.c.bf16 %v509_v0, %v505_v47  ;;  %v1215_v12 = vpack.c.bf16 %v667_v1, %v663_v52  ;;  %v668_v20 = vmul.f32 %v1649_v4, %v1649_v4 }
 0x11a   : > { %v512_v13 = vmul.f32 %v1653_v9, %v1595_v37  ;;  %v511_v14 = vmul.f32 %v1655_v10, %v1597_v38  ;;  %v1661_v15 = vpop.f32.mrb[11].mxu1  ;;  %1204 = vmatprep.subr.bf16.mxu0 %v1203_v5  ;;  %v669_v18 = vmul.f32 %v1655_v10, %v1655_v10  ;;  %v670_v21 = vmul.f32 %v1653_v9, %v1653_v9  ;;  %v501_v5 = vld [vmem:[%s1807_s3 + $0x10] sm:$0xff] }
 0x11b   : > { %v513_v16 = vmul.f32 %v1661_v15, %v1599_v39  ;;  %1208 = vmatprep.subr.bf16.mxu1 %v1207_v11  ;;  %1206 = vmatpush1.bf16.msra.mxu0 %v1205_v62  ;;  %v671_v19 = vmul.f32 %v1661_v15, %v1661_v15 }
 0x11c   : > { %1210 = vmatpush1.bf16.msra.mxu1 %v1209_v2  ;;  %522 = vmatprep.subr.mxu0 %v511_v14  ;;  %v499_v2 = vld [vmem:[%s1807_s3] sm:$0xff] }
 0x11d   : > { %593 = vmatprep.subr.mxu1 %v513_v16 }
 0x11f   : > { %523 = vmatpush1.msra.mxu0 %v510_v7 }
 0x120   : > { %594 = vmatpush1.msra.mxu1 %v512_v13  ;;  %1212 = vmatprep.subr.bf16.mxu0 %v1211_v6 }
 0x121   : > { %1216 = vmatprep.subr.bf16.mxu1 %v1215_v12  ;;  %1173 = vmatmul.mubr.msk.f32.vlgmr.msra.gmra.mrb[12].mxu0 %vm514_vm4, %v498_v17 }
 0x122   : > { %1174 = vmatmul.mubr.msk.f32.vlgmr.msra.gmra.mrb[12].mxu1 %vm514_vm4, %v498_v17  ;;  %1214 = vmatpush1.bf16.msra.mxu0 %v1213_v63 }
 0x123   : > { %1218 = vmatpush1.bf16.msra.mxu1 %v1217_v3  ;;  %676 = vmatprep.subr.mxu0 %v669_v18  ;;  %v500_v3 = vld [vmem:[%s1807_s3 + $0x8] sm:$0xff] }
 0x124   : > { %747 = vmatprep.subr.mxu1 %v671_v19  ;;  %736 = vmatprep.mubr.f32.mxu0 %v1401_v8 }
 0x125   : > { %807 = vmatprep.mubr.f32.mxu1 %v1401_v8 }
 0x126   : > { %677 = vmatpush1.msra.mxu0 %v668_v20 }
 0x127   : > { %748 = vmatpush1.msra.mxu1 %v670_v21  ;;  %1175 = vmatmul.mubr.msk.f32.vlgmr.msra.gmra.mrb[14].mxu0 %vm514_vm4, %v498_v17 }
 0x128   : > { %1176 = vmatmul.mubr.msk.f32.vlgmr.msra.gmra.mrb[14].mxu1 %vm514_vm4, %v498_v17  ;;  %908 = vmatprep.mubr.f32.mxu0 %v1401_v8 }
 0x129   : > { %991 = vmatprep.mubr.f32.mxu1 %v1401_v8 }
 0x1f4   : > { %v584_v22 = vpop.f32.mrb[12].mxu0 }
 0x1f5   : > { %v655_v23 = vpop.f32.mrb[12].mxu1  ;;  %v586_v24 = vpop.f32.mrb[13].mxu0  ;;  %v822_v51 = vmul.f32 0.8, %v584_v22  ;;  %vm818_vm7 = vcmp.lt.f32.partialorder %v584_v22, 0.0 }
 0x1f6   : > { %v657_v25 = vpop.f32.mrb[13].mxu1  ;;  %v824_v53 = vmul.f32 0.8, %v655_v23  ;;  %v823_v57 = vmul.f32 0.8, %v586_v24  ;;  %vm819_vm5 = vcmp.lt.f32.partialorder %v586_v24, 0.0 }
 0x1f7   : > { %v825_v60 = vmul.f32 0.8, %v657_v25  ;;  %vm821_vm8 = vcmp.lt.f32.partialorder %v657_v25, 0.0  ;;  %vm820_vm9 = vcmp.lt.f32.partialorder %v655_v23, 0.0 }
 0x1fa   : > { %v738_v26 = vpop.f32.mrb[14].mxu0 }
 0x1fb   : > { %v739_v27 = vadd.f32 1e-06, %v738_v26  ;;  %v809_v41 = vpop.f32.mrb[14].mxu1  ;;  %v740_v44 = vpop.f32.mrb[15].mxu0 }
 0x1fc   : > { %v810_v45 = vadd.f32 1e-06, %v809_v41  ;;  %v741_v47 = vadd.f32 1e-06, %v740_v44  ;;  %v811_v48 = vpop.f32.mrb[15].mxu1 }
 0x1fd   : > { %1297 = vrcp.f32 %v739_v27  ;;  %v812_v49 = vadd.f32 1e-06, %v811_v48 }
 0x1fe   : > { %1299 = vrcp.f32 %v810_v45 }
 0x1ff   : > { %1301 = vrcp.f32 %v741_v47 }
 0x200   : > { %1303 = vrcp.f32 %v812_v49 }
 0x207   : > { %v1298_v52 = vpop.eup %1297 }
 0x208   : > { %v1300_v54 = vpop.eup %1299  ;;  %v826_v58 = vmul.f32 %v1298_v52, %v822_v51 }
 0x209   : > { %v1302_v59 = vpop.eup %1301  ;;  %v828_v62 = vmul.f32 %v1300_v54, %v824_v53 }
 0x20a   : > { %v1304_v63 = vpop.eup %1303  ;;  %v827_v0 = vmul.f32 %v1302_v59, %v823_v57 }
 0x20b   : > { %v829_v1 = vmul.f32 %v1304_v63, %v825_v60 }
 0x20c   : > { %1177 = vmatprep.subr.msk.mxu0 %vm819_vm5, %v827_v0 }
 0x20d   : > { %1182 = vmatprep.subr.msk.mxu1 %vm821_vm8, %v829_v1  ;;  %1178 = vmatpush1.msk.msra.mxu0 %vm818_vm7, %v826_v58 }
 0x20e   : > { %1183 = vmatpush1.msk.msra.mxu1 %vm820_vm9, %v828_v62  ;;  %1179 = vmatmul.mubr.msk.f32.vlgmr.msra.gmra.mrb[16].mxu0 %vm834_vm6, %v499_v2 }
 0x20f   : > { %1184 = vmatmul.mubr.msk.f32.vlgmr.msra.gmra.mrb[16].mxu1 %vm834_vm6, %v499_v2  ;;  %914 = vmatprep.mubr.f32.mxu0 %v1401_v8 }
 0x210   : > { %997 = vmatprep.mubr.f32.mxu1 %v1401_v8 }
 0x212   : > { %1180 = vmatmul.mubr.msk.f32.gmra.mrb[18].mxu0 %vm834_vm6, %v500_v3 }
 0x213   : > { %1185 = vmatmul.mubr.msk.f32.gmra.mrb[18].mxu1 %vm834_vm6, %v500_v3  ;;  %920 = vmatprep.mubr.f32.mxu0 %v1401_v8 }
 0x214   : > { %1003 = vmatprep.mubr.f32.mxu1 %v1401_v8 }
 0x216   : > { %1181 = vmatmul.mubr.msk.f32.gmra.mrb[20].mxu0 %vm834_vm6, %v501_v5 }
 0x217   : > { %1186 = vmatmul.mubr.msk.f32.gmra.mrb[20].mxu1 %vm834_vm6, %v501_v5 }
 0x2e1   : > { %v910_v6 = vpop.f32.mrb[16].mxu0 }
 0x2e2   : > { %v1010_v7 = vmul.f32 %v910_v6, %v1601_v40  ;;  %v993_v11 = vpop.f32.mrb[16].mxu1  ;;  %v912_v12 = vpop.f32.mrb[17].mxu0 }
 0x2e3   : > { %v1012_v13 = vmul.f32 %v993_v11, %v1605_v42  ;;  %v1011_v14 = vmul.f32 %v912_v12, %v1607_v43  ;;  %v995_v16 = vpop.f32.mrb[17].mxu1 }
 0x2e4   : > { %v1022_v17 = vsub.f32 %v1577_v28, %v1010_v7  ;;  %v1013_v8 = vmul.f32 %v995_v16, %v1613_v46 }
 0x2e5   : > { %v1024_v18 = vsub.f32 %v1579_v29, %v1012_v13  ;;  %v1023_v19 = vsub.f32 %v1581_v30, %v1011_v14  ;;  %v916_v20 = vpop.f32.mrb[18].mxu0 }
 0x2e6   : > { %1034 = vst [vmem:[%s1713_s7] sm:$0xff] %v1022_v17  ;;  %v1025_v40 = vsub.f32 %v1583_v31, %v1013_v8  ;;  %v1014_v28 = vmul.f32 %v916_v20, %v1621_v50  ;;  %v999_v42 = vpop.f32.mrb[18].mxu1  ;;  %v918_v43 = vpop.f32.mrb[19].mxu0 }
 0x2e7   : > { %1036 = vst [vmem:[%s1713_s7 + $0x10] sm:$0xff] %v1024_v18  ;;  %1035 = vst [vmem:[%s1713_s7 + $0x8] sm:$0xff] %v1023_v19  ;;  %v1016_v29 = vmul.f32 %v999_v42, %v1631_v55  ;;  %v1015_v30 = vmul.f32 %v918_v43, %v1633_v56  ;;  %v1001_v46 = vpop.f32.mrb[19].mxu1 }
 0x2e8   : > { %1037 = vst [vmem:[%s1713_s7 + $0x18] sm:$0xff] %v1025_v40  ;;  %v1026_v21 = vsub.f32 %v1585_v32, %v1014_v28  ;;  %v1017_v31 = vmul.f32 %v1001_v46, %v1643_v61 }
 0x2e9   : > { %v1028_v50 = vsub.f32 %v1587_v33, %v1016_v29  ;;  %v1027_v22 = vsub.f32 %v1589_v34, %v1015_v30  ;;  %v922_v23 = vpop.f32.mrb[20].mxu0 }
 0x2ea   : > { %1038 = vst [vmem:[%s1713_s7 + $0x20] sm:$0xff] %v1026_v21  ;;  %v1029_v55 = vsub.f32 %v1591_v35, %v1017_v31  ;;  %v1018_v56 = vmul.f32 %v922_v23, %v1649_v4  ;;  %v1005_v24 = vpop.f32.mrb[20].mxu1  ;;  %v924_v25 = vpop.f32.mrb[21].mxu0 }
 0x2eb   : > { %1040 = vst [vmem:[%s1713_s7 + $0x30] sm:$0xff] %v1028_v50  ;;  %1039 = vst [vmem:[%s1713_s7 + $0x28] sm:$0xff] %v1027_v22  ;;  %v1020_v32 = vmul.f32 %v1005_v24, %v1653_v9  ;;  %v1019_v33 = vmul.f32 %v924_v25, %v1655_v10  ;;  %v1007_v34 = vpop.f32.mrb[21].mxu1 }
 0x2ec   : > { %1041 = vst [vmem:[%s1713_s7 + $0x38] sm:$0xff] %v1029_v55  ;;  %v1030_v35 = vsub.f32 %v1593_v36, %v1018_v56  ;;  %v1021_v61 = vmul.f32 %v1007_v34, %v1661_v15 }
 0x2ed   : > { %v1032_v4 = vsub.f32 %v1595_v37, %v1020_v32  ;;  %v1031_v26 = vsub.f32 %v1597_v38, %v1019_v33 }
 0x2ee   : > { %1042 = vst [vmem:[%s1713_s7 + $0x40] sm:$0xff] %v1030_v35  ;;  %v1033_v9 = vsub.f32 %v1599_v39, %v1021_v61 }
 0x2ef   : > { %1044 = vst [vmem:[%s1713_s7 + $0x50] sm:$0xff] %v1032_v4  ;;  %1043 = vst [vmem:[%s1713_s7 + $0x48] sm:$0xff] %v1031_v26 }
 0x2f0   : > { %1045 = vst [vmem:[%s1713_s7 + $0x58] sm:$0xff] %v1033_v9 }
 0x2f1   : > { %1318 = shalt.err (!%p1315_p7)
}
 0x2f2   : > { %s1319_s5 = scalar_lea.hbm %s1745_s12, 1536  ;;  %s1323_s18 = scalar_lea.hbm %s1808_s4, 6144 }
 0x2f3   : > { %p1320_p10 = scmp.ne.s32.totalorder %s1745_s12, %s1319_s5  ;;  %p1324_p13 = scmp.lt.u32.totalorder %s1745_s12, %s1808_s4 }
 0x2f4   : > { %p1325_p0 = scmp.lt.u32.totalorder %s1323_s18, %s1319_s5  ;;  %p1327_p2 = scmp.lt.u32.totalorder %s1319_s5, %s1745_s12 }
 0x2f5   : > { %p1321_p11 = pnand %p1320_p10, %p1492_p8 }
 0x2f6   : > { %p1326_p1 = por %p1325_p0, %p1324_p13 }
 0x2f7   : > { %p1322_p12 = pneg %p1321_p11 }
 0x2f8   : > { %p1328_p3 = por %p1327_p2, %p1326_p1 }
 0x2fa   : > { %p1329_p4 = pnand %p1328_p3, %p1322_p12 }
 0x2fc   : > { %1332 = shalt.err (!%p1329_p4)
}
 0x2fd   : > { %s1404_s11 = smov 512   ;;  %s1405_s14 = smov 1024  }
 0x2fe   : > { %s1406_s23 = smov 32  }
 0x2ff   : > { %1221 = dma.vmem_to_hbm [thread:$0]  (%p1492_p8), %s1735_s19, 1536, %s1745_s12, %s1047_s13, %s1404_s11, %s1405_s14, %s1406_s23  }
 0x300 PF: > { %p1227_p5 = scmp.ge.s32.totalorder %s1399_s22, 2  ;;  %s1077_s24 = sand.u32 1, %s1371_s15  }
 0x301   : > { %s1078_s27 = scalar_lea.sflag [#allocation4], %s1077_s24 }
 0x302   : > { %p1224_p6 = pnand %p1227_p5, %p1496_p9 }
 0x304   : > { %1366 = dma.done.wait (!%p1224_p6), %s1078_s27, 1536  }
 0x305   : > { %1368 = vsyncadd (!%p1224_p6), %s1078_s27, 4294965760  ;;  %s17_s22 = sadd.s32 1, %s1399_s22   ;;  %s1814_s15 = smov %s1375_s16 }
 0x306   : > { %p14_p7 = scmp.ge.s32.totalorder %s17_s22, 6   ;;  %s1815_s16 = smov %s1379_s17 }
 0x307   : > { %s1816_s17 = smov %s1504_s8  ;;  %s1817_s18 = smov %s1391_s20 }
 0x308   : > { %s1818_s19 = smov %s1395_s21  ;;  %s1819_s20 = smov %s1822_s25 }
 0x309   : > { %s1820_s21 = smov %s1826_s26  ;;  %16 = sbr.rel (!%p14_p7) target bundleno = 5 (0x5), region = 99 }
 0x310   :  { %1083 = vsyncpa [#allocation4], 1 }
 0x311   :  { %1085 = vsyncpa [#allocation4 + $0x1], 1 }

</bundles_post_ra>
